<compile_context>
chip_gen: v5e
topology: v5e:2x2
jax: 0.10.0
libtpu: 0.0.40
codegen_flags: <defaults>
</compile_context>

<pallas_src>
import functools

import jax
import jax.numpy as jnp
from jax import lax
from jax.experimental import pallas as pl
from jax.experimental.pallas import tpu as pltpu


def _round_up(v, m):
    return (v + m - 1) // m * m


def _nsvq_kernel(x_ref, cb_ref, cb2_ref, rv_ref, out_ref, *, eps, score_dtype):
    x = x_ref[...]                       # (tN, D) f32
    cb = cb_ref[...]                     # (K, D) f32 (padded rows are zero)
    cb2 = cb2_ref[...]                   # (1, K)  f32 (padded entries = +huge)
    rv = rv_ref[...]                     # (tN, D) f32

    k = cb.shape[0]

    # ---- nearest-code search ----------------------------------------------
    # argmin_k ||x - c_k||^2 == argmin_k (||c_k||^2 - 2 x.c_k): the ||x||^2 row
    # constant cannot change the argmin, and ||c_k||^2 is precomputed once.
    xs = x.astype(score_dtype)
    cs = cb.astype(score_dtype)
    # contract D (lanes) of both operands directly; no codebook transpose.
    xc = lax.dot_general(xs, cs,
                         dimension_numbers=(((1,), (1,)), ((), ())),
                         preferred_element_type=jnp.float32)        # (tN, K) MXU
    dist = cb2 - 2.0 * xc

    min_d = jnp.min(dist, axis=1, keepdims=True)                    # (tN, 1)
    col = lax.broadcasted_iota(jnp.int32, dist.shape, 1)            # (tN, K)
    idx = jnp.min(jnp.where(dist == min_d, col, jnp.int32(k)),
                  axis=1, keepdims=True)                            # (tN, 1)

    # exact gather of the winning code via one-hot @ codebook (f32 MXU);
    # padded codebook rows are zero so they are harmless even in principle.
    onehot = (col == idx).astype(jnp.float32)                       # (tN, K)
    best = jnp.dot(onehot, cb, preferred_element_type=jnp.float32)  # (tN, D)

    # ---- noise substitution -------------------------------------------------
    diff = x - best
    norm_best = jnp.sqrt(jnp.sum(diff * diff, axis=1, keepdims=True))    # (tN,1)
    inv_norm_rand = lax.rsqrt(jnp.sum(rv * rv, axis=1, keepdims=True))   # EUP
    # matches the reference form: (||x-best|| / ||rv|| + eps) * rv
    vq_error = (norm_best * inv_norm_rand + eps) * rv
    out_ref[...] = (x + vq_error).astype(out_ref.dtype)


def hrr_nsvq_forward(x, codebooks, random_vector, *, eps=1e-12, tile_n=256,
                     score_dtype=jnp.bfloat16):
    """Pallas implementation of HRRNSVQ.forward.

    x:              (N, dims) float32
    codebooks:      (num_embeddings, dims) float32  (the hrr.init buffer)
    random_vector:  (N, dims) float32 ~ Normal(0, 1) (the Normal(0,1).sample)
    score_dtype:    dtype of the distance matmul inputs (bf16 = full MXU rate;
                    set jnp.float32 for bit-faithful nearest-code selection).
    """
    x = jnp.asarray(x, jnp.float32)
    codebooks = jnp.asarray(codebooks, jnp.float32)
    random_vector = jnp.asarray(random_vector, jnp.float32)

    n, d = x.shape
    k = codebooks.shape[0]

    # ---- padding: lane-dense K, sublane-aligned N tiles ---------------------
    k_pad = _round_up(max(k, 128), 128)
    tile = max(8, _round_up(min(tile_n, _round_up(n, 8)), 8))
    n_pad = _round_up(n, tile)

    cb_p = jnp.zeros((k_pad, d), jnp.float32).at[:k].set(codebooks)
    # sentinel ||c||^2 for padded codes so they can never win the argmin.
    cb2 = jnp.full((1, k_pad), 1e30, jnp.float32).at[0, :k].set(
        jnp.sum(codebooks * codebooks, axis=1))

    if n_pad == n:
        x_p, rv_p = x, random_vector
    else:
        x_p = jnp.concatenate([x, jnp.zeros((n_pad - n, d), jnp.float32)], 0)
        # pad the noise with ones so padded rows stay finite (sliced off below).
        rv_p = jnp.concatenate(
            [random_vector, jnp.ones((n_pad - n, d), jnp.float32)], 0)

    # VMEM budget: double-buffered x/rv/out tiles + resident codebook + norms.
    est_bytes = 4 * (2 * 3 * tile * d + 2 * k_pad * d + 2 * 8 * k_pad)
    vmem_limit = int(min(64 << 20, max(32 << 20, 2 * est_bytes + (8 << 20))))

    kernel = functools.partial(_nsvq_kernel, eps=eps, score_dtype=score_dtype)

    out = pl.pallas_call(
        kernel,
        out_shape=jax.ShapeDtypeStruct((n_pad, d), jnp.float32),
        grid_spec=pltpu.PrefetchScalarGridSpec(
            num_scalar_prefetch=0,
            grid=(n_pad // tile,),
            in_specs=[
                pl.BlockSpec((tile, d), lambda i: (i, 0)),    # x tile
                pl.BlockSpec((k_pad, d), lambda i: (0, 0)),   # codebook (resident)
                pl.BlockSpec((1, k_pad), lambda i: (0, 0)),   # ||c||^2 (resident)
                pl.BlockSpec((tile, d), lambda i: (i, 0)),    # noise tile
            ],
            out_specs=pl.BlockSpec((tile, d), lambda i: (i, 0)),
        ),
        compiler_params=pltpu.CompilerParams(
            dimension_semantics=("parallel",),   # shards across v7x's 2 TCs
            vmem_limit_bytes=vmem_limit,
        ),
    )(x_p, cb_p, cb2, rv_p)

    return out[:n] if n_pad != n else out


def _reference_forward(x, codebooks, random_vector, eps=1e-12):
    # Pure-JAX transcription of the PyTorch forward (HIGHEST precision matmul
    # so the reference argmin is not perturbed by XLA's default bf16 dot).
    dist = (jnp.sum(x ** 2, axis=1, keepdims=True)
            - 2.0 * jnp.dot(x, codebooks.T, precision=lax.Precision.HIGHEST)
            + jnp.sum(codebooks ** 2, axis=1)[None, :])
    idx = jnp.argmin(dist, axis=1)
    best = codebooks[idx]
    nb = jnp.sqrt(jnp.sum((x - best) ** 2, axis=1, keepdims=True))
    nr = jnp.sqrt(jnp.sum(random_vector ** 2, axis=1, keepdims=True))
    return x + (nb / nr + eps) * random_vector


if __name__ == "__main__":
    num_embeddings = 32
    dims = 128
    n = 16
    eps = 1e-12

    key = jax.random.PRNGKey(0)
    k_x, k_cb, k_rv = jax.random.split(key, 3)

    x = jax.random.normal(k_x, (n, dims), dtype=jnp.float32)
    # hrr.init((num_embeddings, dims)): zero-mean normal with variance 1/dims.
    codebooks = jax.random.normal(k_cb, (num_embeddings, dims),
                                  dtype=jnp.float32) / jnp.sqrt(jnp.float32(dims))
    # Normal(0, 1).sample(x.shape) drawn deterministically here (kernel input).
    random_vector = jax.random.normal(k_rv, (n, dims), dtype=jnp.float32)

    ref = _reference_forward(x, codebooks, random_vector, eps=eps)

    # Default fast path: bf16 distance scores, f32 exact gather. Near-tie
    # argmin flips only swap between nearly-equidistant codes, so the output
    # error stays tiny; check with a modest tolerance.
    out = jax.block_until_ready(
        hrr_nsvq_forward(x, codebooks, random_vector, eps=eps))
    assert out.shape == (n, dims) and out.dtype == jnp.float32
    assert jnp.allclose(out, ref, atol=1e-2, rtol=1e-2), "bf16-score mismatch"

    # f32 distance scores: faithful nearest-code selection, tight tolerance.
    out32 = jax.block_until_ready(
        hrr_nsvq_forward(x, codebooks, random_vector, eps=eps,
                         score_dtype=jnp.float32))
    assert jnp.allclose(out32, ref, atol=1e-3, rtol=1e-3), "f32-score mismatch"

    print("KERNEL_OK")
</pallas_src>

<mosaic_0001>
module attributes {stable_mosaic.version = 11 : i64} {
  func.func @_nsvq_kernel(%arg0: i32, %arg1: memref<16x128xf32, #tpu.memory_space<vmem>>, %arg2: memref<128x128xf32, #tpu.memory_space<vmem>>, %arg3: memref<1x128xf32, #tpu.memory_space<vmem>>, %arg4: memref<16x128xf32, #tpu.memory_space<vmem>>, %arg5: memref<16x128xf32, #tpu.memory_space<vmem>>) attributes {dimension_semantics = [#tpu.dimension_semantics<parallel>], iteration_bounds = array<i64: 1>, scalar_prefetch = 0 : i64, scratch_operands = 0 : i64, tpu.core_type = #tpu.core_type<tc>, window_params = [{transform_indices = @transform_0, window_bounds = array<i64: 16, 128>}, {pipeline_mode = #tpu.pipeline_mode<synchronous>, transform_indices = @transform_1, window_bounds = array<i64: 128, 128>}, {pipeline_mode = #tpu.pipeline_mode<synchronous>, transform_indices = @transform_2, window_bounds = array<i64: 1, 128>}, {transform_indices = @transform_3, window_bounds = array<i64: 16, 128>}, {transform_indices = @transform_4, window_bounds = array<i64: 16, 128>}]} {
    %c0 = arith.constant 0 : index
    %c0_0 = arith.constant 0 : index
    %0 = vector.load %arg1[%c0, %c0_0] : memref<16x128xf32, #tpu.memory_space<vmem>>, vector<16x128xf32>
    %c0_1 = arith.constant 0 : index
    %c0_2 = arith.constant 0 : index
    %1 = vector.load %arg2[%c0_1, %c0_2] : memref<128x128xf32, #tpu.memory_space<vmem>>, vector<128x128xf32>
    %c0_3 = arith.constant 0 : index
    %c0_4 = arith.constant 0 : index
    %2 = vector.load %arg3[%c0_3, %c0_4] : memref<1x128xf32, #tpu.memory_space<vmem>>, vector<1x128xf32>
    %c0_5 = arith.constant 0 : index
    %c0_6 = arith.constant 0 : index
    %3 = vector.load %arg4[%c0_5, %c0_6] : memref<16x128xf32, #tpu.memory_space<vmem>>, vector<16x128xf32>
    %4 = arith.truncf %0 : vector<16x128xf32> to vector<16x128xbf16>
    %5 = arith.truncf %1 : vector<128x128xf32> to vector<128x128xbf16>
    %cst = arith.constant dense<0.000000e+00> : vector<16x128xf32>
    %6 = tpu.matmul %4, %5, %cst {dimension_numbers = #tpu.dot_dimension_numbers<[1], [1], [0], [0], [0, 0, 1, 0], [], []>} : vector<16x128xbf16>, vector<128x128xbf16>, vector<16x128xf32> -> vector<16x128xf32>
    %cst_7 = arith.constant 2.000000e+00 : f32
    %7 = vector.broadcast %cst_7 : f32 to vector<16x128xf32>
    %8 = arith.mulf %7, %6 : vector<16x128xf32>
    %9 = vector.broadcast %2 : vector<1x128xf32> to vector<16x128xf32>
    %10 = arith.subf %9, %8 : vector<16x128xf32>
    %cst_8 = arith.constant dense<0x7F800000> : vector<16xf32>
    %11 = vector.multi_reduction <minimumf>, %10, %cst_8 [1] : vector<16x128xf32> to vector<16xf32>
    %12 = vector.shape_cast %11 : vector<16xf32> to vector<16x1xf32>
    %13 = tpu.iota {dimensions = array<i32: 1>} : vector<16x128xi32>
    %14 = vector.broadcast %12 : vector<16x1xf32> to vector<16x128xf32>
    %15 = arith.cmpf oeq, %10, %14 : vector<16x128xf32>
    %c128_i32 = arith.constant 128 : i32
    %16 = vector.broadcast %c128_i32 : i32 to vector<16x128xi32>
    %17 = arith.select %15, %13, %16 : vector<16x128xi1>, vector<16x128xi32>
    %cst_9 = arith.constant dense<2147483647> : vector<16xi32>
    %18 = vector.multi_reduction <minsi>, %17, %cst_9 [1] : vector<16x128xi32> to vector<16xi32>
    %19 = vector.shape_cast %18 : vector<16xi32> to vector<16x1xi32>
    %20 = vector.broadcast %19 : vector<16x1xi32> to vector<16x128xi32>
    %21 = arith.cmpi eq, %13, %20 : vector<16x128xi32>
    %22 = arith.extui %21 : vector<16x128xi1> to vector<16x128xi32>
    %23 = arith.sitofp %22 : vector<16x128xi32> to vector<16x128xf32>
    %cst_10 = arith.constant dense<0.000000e+00> : vector<16x128xf32>
    %24 = tpu.matmul %23, %1, %cst_10 {dimension_numbers = #tpu.dot_dimension_numbers<[1], [0], [0], [1], [0, 0, 1, 1], [], []>} : vector<16x128xf32>, vector<128x128xf32>, vector<16x128xf32> -> vector<16x128xf32>
    %25 = arith.subf %0, %24 : vector<16x128xf32>
    %26 = arith.mulf %25, %25 : vector<16x128xf32>
    %cst_11 = arith.constant dense<0.000000e+00> : vector<16xf32>
    %27 = vector.multi_reduction <add>, %26, %cst_11 [1] : vector<16x128xf32> to vector<16xf32>
    %28 = vector.shape_cast %27 : vector<16xf32> to vector<16x1xf32>
    %29 = math.sqrt %28 : vector<16x1xf32>
    %30 = arith.mulf %3, %3 : vector<16x128xf32>
    %cst_12 = arith.constant dense<0.000000e+00> : vector<16xf32>
    %31 = vector.multi_reduction <add>, %30, %cst_12 [1] : vector<16x128xf32> to vector<16xf32>
    %32 = vector.shape_cast %31 : vector<16xf32> to vector<16x1xf32>
    %33 = math.rsqrt %32 : vector<16x1xf32>
    %34 = arith.mulf %29, %33 : vector<16x1xf32>
    %cst_13 = arith.constant 9.99999996E-13 : f32
    %35 = vector.broadcast %cst_13 : f32 to vector<16x1xf32>
    %36 = arith.addf %34, %35 : vector<16x1xf32>
    %37 = vector.broadcast %36 : vector<16x1xf32> to vector<16x128xf32>
    %38 = arith.mulf %37, %3 : vector<16x128xf32>
    %39 = arith.addf %0, %38 : vector<16x128xf32>
    %c0_14 = arith.constant 0 : index
    %c0_15 = arith.constant 0 : index
    %40 = vector.load %arg5[%c0_14, %c0_15] : memref<16x128xf32, #tpu.memory_space<vmem>>, vector<16x128xf32>
    tpu.vector_store %arg5[%c0_14, %c0_15], %39 {strides = array<i32>} : memref<16x128xf32, #tpu.memory_space<vmem>>, vector<16x128xf32>,
    return
  }
  func.func @transform_0(%arg0: i32) -> (i32, i32) {
    %c0_i32 = arith.constant 0 : i32
    %c0_i32_0 = arith.constant 0 : i32
    return %arg0, %c0_i32 : i32, i32
  }
  func.func @transform_1(%arg0: i32) -> (i32, i32) {
    %c0_i32 = arith.constant 0 : i32
    %c0_i32_0 = arith.constant 0 : i32
    %c0_i32_1 = arith.constant 0 : i32
    return %c0_i32, %c0_i32_0 : i32, i32
  }
  func.func @transform_2(%arg0: i32) -> (i32, i32) {
    %c0_i32 = arith.constant 0 : i32
    %c0_i32_0 = arith.constant 0 : i32
    %c0_i32_1 = arith.constant 0 : i32
    return %c0_i32, %c0_i32_0 : i32, i32
  }
  func.func @transform_3(%arg0: i32) -> (i32, i32) {
    %c0_i32 = arith.constant 0 : i32
    %c0_i32_0 = arith.constant 0 : i32
    return %arg0, %c0_i32 : i32, i32
  }
  func.func @transform_4(%arg0: i32) -> (i32, i32) {
    %c0_i32 = arith.constant 0 : i32
    %c0_i32_0 = arith.constant 0 : i32
    return %arg0, %c0_i32 : i32, i32
  }
}

</mosaic_0001>

<bundles_post_ra>
// kernel: tpu_custom_call.1
= control target key start
LH: loop header
LB: loop body
LE: loop exit
PB: predicated region body
PF: predicated region fallthrough
CT: control target
= control target key end

     0   :  { %9 = vsyncpa [#allocation3], 0  ;;  %s467_s0 = inlined_call_operand.hbm [shape: f32[16,128], index: 0, kind: input, shape index: {}]   ;;  %s468_s1 = inlined_call_operand.hbm [shape: f32[128,128], index: 1, kind: input, shape index: {}]   ;;  %s469_s2 = inlined_call_operand.vmem [shape: f32[1,128], index: 2, kind: input, shape index: {}]   ;;  %s470_s3 = inlined_call_operand.hbm [shape: f32[16,128], index: 3, kind: input, shape index: {}]   ;;  %s471_s4 = inlined_call_operand.hbm [shape: f32[16,128], index: 4, kind: output, shape index: {}]  }
   0x1   :  { %10 = vsyncpa [#allocation6], 0 }
   0x2   :  { %11 = vsyncpa [#allocation4], 0  ;;  %s29_s17 = sshll.u32 %s468_s1, 4  ;;  %s393_s18 = smov [#allocation5]   ;;  %s30_s17 = int_to_ptr.hbm [resolvable:$true] %s29_s17 }
   0x3   :  { %s31_s19 = sshll.u32 %s393_s18, 4  ;;  %s16_s22 = sshll.u32 %s467_s0, 4  ;;  %s32_s19 = int_to_ptr.vmem [resolvable:$true] %s31_s19  ;;  %s17_s22 = int_to_ptr.hbm [resolvable:$true] %s16_s22 }
   0x4   :  { %s394_s23 = smov 128   ;;  %s395_s24 = smov 8  }
   0x5   :  { %37 = dma.hbm_to_vmem [thread:$0]  %s30_s17, 2048, %s32_s19, [#allocation6], %s394_s23, %s394_s23, %s395_s24  }
   0x6   :  { %s396_s25 = smov [#allocation2]   ;;  %s44_s1 = sshll.u32 %s470_s3, 4  ;;  %s45_s1 = int_to_ptr.hbm [resolvable:$true] %s44_s1 }
   0x7   :  { %s18_s26 = sshll.u32 %s396_s25, 4  ;;  %s397_s0 = smov [#allocation7]   ;;  %s19_s26 = int_to_ptr.vmem [resolvable:$true] %s18_s26 }
   0x8   :  { %24 = dma.hbm_to_vmem [thread:$0]  %s17_s22, 256, %s19_s26, [#allocation3], %s394_s23, %s394_s23, %s395_s24  }
   0x9   :  { %s46_s29 = sshll.u32 %s397_s0, 4  ;;  %s47_s29 = int_to_ptr.vmem [resolvable:$true] %s46_s29 }
   0xa   :  { %52 = dma.hbm_to_vmem [thread:$0]  %s45_s1, 256, %s47_s29, [#allocation6], %s394_s23, %s394_s23, %s395_s24  }
   0xb   :  { %387 = dma.done.wait [#allocation3], 256  }
   0xc   :  { %388 = vsyncadd [#allocation3], 4294967040 }
   0xd   :  { %389 = dma.done.wait [#allocation6], 2304  }
   0xe   :  { %390 = vsyncadd [#allocation6], 4294964992  ;;  %v81_v0 = vld [vmem:[#allocation5 + $0x70] sm:$0xff]  ;;  %v82_v1 = vld [vmem:[#allocation5 + $0x78] sm:$0xff]  ;;  %v120_v34 = vlaneseq  ;;  %v398_v58 = vmov 1.0   ;;  %s257_s8 = sshll.u32 %s471_s4, 4  ;;  %s258_s8 = int_to_ptr.hbm [resolvable:$true] %s257_s8 }
   0xf   :  { %v94_v2 = vpack.c.bf16 %v82_v1, %v81_v0  ;;  %160 = vmatpush.msra.mxu1 %v82_v1  ;;  %v79_v3 = vld [vmem:[#allocation5 + $0x60] sm:$0xff]  ;;  %v80_v4 = vld [vmem:[#allocation5 + $0x68] sm:$0xff]  ;;  %v78_v6 = vld [vmem:[#allocation5 + $0x58] sm:$0xff] }
  0x10   :  { %v93_v5 = vpack.c.bf16 %v80_v4, %v79_v3  ;;  %v77_v7 = vld [vmem:[#allocation5 + $0x50] sm:$0xff]  ;;  %v76_v8 = vld [vmem:[#allocation5 + $0x48] sm:$0xff]  ;;  %v75_v9 = vld [vmem:[#allocation5 + $0x40] sm:$0xff]  ;;  %v121_v35 = vand.u32 127, %v120_v34 }
  0x11   :  { %95 = vmatpush.bf16.xpose.msra.mxu0 %v94_v2  ;;  %161 = vmatpush.msra.mxu1 %v81_v0  ;;  %v92_v10 = vpack.c.bf16 %v78_v6, %v77_v7  ;;  %v74_v11 = vld [vmem:[#allocation5 + $0x38] sm:$0xff]  ;;  %v73_v12 = vld [vmem:[#allocation5 + $0x30] sm:$0xff]  ;;  %v72_v13 = vld [vmem:[#allocation5 + $0x28] sm:$0xff]  ;;  %v91_v15 = vpack.c.bf16 %v76_v8, %v75_v9 }
  0x12   :  { %v71_v14 = vld [vmem:[#allocation5 + $0x20] sm:$0xff]  ;;  %v70_v16 = vld [vmem:[#allocation5 + $0x18] sm:$0xff]  ;;  %v69_v17 = vld [vmem:[#allocation5 + $0x10] sm:$0xff]  ;;  %v90_v20 = vpack.c.bf16 %v74_v11, %v73_v12 }
  0x13   :  { %162 = vmatpush.msra.mxu1 %v80_v4  ;;  %v68_v18 = vld [vmem:[#allocation5 + $0x8] sm:$0xff]  ;;  %v67_v19 = vld [vmem:[#allocation5] sm:$0xff]  ;;  %v89_v21 = vpack.c.bf16 %v72_v13, %v71_v14  ;;  %v88_v22 = vpack.c.bf16 %v70_v16, %v69_v17  ;;  %v443_v24 = vld [vmem:[#allocation2] sm:$0xff] }
  0x14   :  { %v87_v23 = vpack.c.bf16 %v68_v18, %v67_v19  ;;  %v445_v25 = vld [vmem:[#allocation2 + $0x8] sm:$0xff]  ;;  %v282_v27 = vld [vmem:[%s469_s2] ss:$0 sm:$0xff]  ;;  %v84_v63 = vld [vmem:[#allocation7] sm:$0xff]  ;;  %s399_s2 = smov [#allocation8]  }
  0x15   :  { %163 = vmatpush.msra.mxu1 %v79_v3  ;;  %v86_v26 = vpack.c.bf16 %v445_v25, %v443_v24  ;;  %v215_v0 = vmul.f32 %v84_v63, %v84_v63  ;;  %v453_v4 = vld [vmem:[#allocation7 + $0x8] sm:$0xff]  ;;  %s255_s5 = sshll.u32 %s399_s2, 4  ;;  %s256_s5 = int_to_ptr.vmem [resolvable:$true] %s255_s5 }
  0x17   :  { %164 = vmatpush.msra.mxu1 %v78_v6 }
  0x19   :  { %96 = vmatpush.bf16.xpose.msra.mxu0 %v93_v5  ;;  %165 = vmatpush.msra.mxu1 %v77_v7  ;;  %v216_v7 = vmul.f32 %v453_v4, %v453_v4 }
  0x1b   :  { %166 = vmatpush.msra.mxu1 %v76_v8 }
  0x1d   :  { %167 = vmatpush.msra.mxu1 %v75_v9 }
  0x1f   :  { %168 = vmatpush.msra.mxu1 %v74_v11 }
  0x21   :  { %97 = vmatpush.bf16.xpose.msra.mxu0 %v92_v10  ;;  %169 = vmatpush.msra.mxu1 %v73_v12 }
  0x23   :  { %170 = vmatpush.msra.mxu1 %v72_v13 }
  0x25   :  { %171 = vmatpush.msra.mxu1 %v71_v14 }
  0x27   :  { %172 = vmatpush.msra.mxu1 %v70_v16 }
  0x29   :  { %98 = vmatpush.bf16.xpose.msra.mxu0 %v91_v15  ;;  %173 = vmatpush.msra.mxu1 %v69_v17 }
  0x2b   :  { %174 = vmatpush.msra.mxu1 %v68_v18 }
  0x2d   :  { %175 = vmatpush.msra.mxu1 %v67_v19 }
  0x31   :  { %99 = vmatpush.bf16.xpose.msra.mxu0 %v90_v20 }
  0x39   :  { %100 = vmatpush.bf16.xpose.msra.mxu0 %v89_v21 }
  0x41   :  { %101 = vmatpush.bf16.xpose.msra.mxu0 %v88_v22 }
  0x49   :  { %102 = vmatpush.bf16.xpose.msra.mxu0 %v87_v23 }
  0x50   :  { %103 = vmatmul.bf16.vlgmr.msra.gmra.mxu0 %v86_v26 }
  0xcd   :  { %v104_v28 = vpop.f32.mrf.mxu0 }
  0xce   :  { %v109_v29 = vmul.f32 2.0, %v104_v28 }
  0xd0   :  { %v114_v30 = vsub.f32 %v282_v27, %v109_v29 }
  0xd2   :  { %116 = vmin.xlane.f32.xlu0 %v114_v30 }
  0xd5   :  { %v106_v31 = vpop.f32.mrf.mxu0 }
  0xd6   :  { %v110_v32 = vmul.f32 2.0, %v106_v31 }
  0xd8   :  { %v115_v33 = vsub.f32 %v282_v27, %v110_v32 }
  0xda   :  { %118 = vmin.xlane.f32.xlu0 %v115_v33 }
 0x145   :  { %v117_v36 = vpop.xlane.xlu0 %116 }
 0x146   :  { %vm122_vm0 = vcmp.eq.f32.partialorder %v114_v30, %v117_v36 }
 0x147   :  { %v124_v37 = vsel %vm122_vm0, %v121_v35, 128 }
 0x148   :  { %v127_v38 = vshra.s32 %v124_v37, 16  ;;  %v126_v44 = vand.u32 65535, %v124_v37 }
 0x14a   :  { %v129_v39 = vcvt.s32.f32 %v127_v38  ;;  %v128_v46 = vcvt.s32.f32 %v126_v44 }
 0x14c   :  { %130 = vmin.xlane.f32.xlu1 %v129_v39 }
 0x14d   :  { %v119_v40 = vpop.xlane.xlu0 %118 }
 0x14e   :  { %vm123_vm1 = vcmp.eq.f32.partialorder %v115_v33, %v119_v40 }
 0x14f   :  { %v125_v41 = vsel %vm123_vm1, %v121_v35, 128 }
 0x150   :  { %v141_v42 = vshra.s32 %v125_v41, 16  ;;  %v140_v48 = vand.u32 65535, %v125_v41 }
 0x152   :  { %v143_v43 = vcvt.s32.f32 %v141_v42  ;;  %v142_v50 = vcvt.s32.f32 %v140_v48 }
 0x154   :  { %144 = vmin.xlane.f32.xlu1 %v143_v43 }
 0x1bf   :  { %v131_v45 = vpop.xlane.xlu1 %130 }
 0x1c0   :  { %vm132_vm2 = vcmp.eq.f32.partialorder %v129_v39, %v131_v45  ;;  %v137_v52 = vcvt.f32.s32 %v131_v45 }
 0x1c1   :  { %v133_v47 = vsel %vm132_vm2, %v128_v46, inf }
 0x1c2   :  { %134 = vmin.xlane.f32.xlu2 %v133_v47  ;;  %v138_v54 = vshll.u32 %v137_v52, 16 }
 0x1c7   :  { %v145_v49 = vpop.xlane.xlu1 %144 }
 0x1c8   :  { %vm146_vm3 = vcmp.eq.f32.partialorder %v143_v43, %v145_v49  ;;  %v151_v57 = vcvt.f32.s32 %v145_v49 }
 0x1c9   :  { %v147_v51 = vsel %vm146_vm3, %v142_v50, inf }
 0x1ca   :  { %148 = vmin.xlane.f32.xlu2 %v147_v51  ;;  %v152_v60 = vshll.u32 %v151_v57, 16 }
 0x1d2   :  { %217 = vadd.xlane.f32.xlu2 %v215_v0 }
 0x235   :  { %v135_v53 = vpop.xlane.xlu2 %134 }
 0x236   :  { %v136_v55 = vcvt.f32.s32 %v135_v53 }
 0x238   :  { %v139_v56 = vadd.s32 %v138_v54, %v136_v55 }
 0x23a   :  { %vm154_vm4 = vcmp.eq.s32.totalorder %v121_v35, %v139_v56 }
 0x23b   :  { %273 = vmatmul.msk.f32.vlgmr.msra.gmra.mxu1 %vm154_vm4, %v398_v58 }
 0x23d   :  { %v149_v59 = vpop.xlane.xlu2 %148 }
 0x23e   :  { %v150_v61 = vcvt.f32.s32 %v149_v59 }
 0x240   :  { %v153_v62 = vadd.s32 %v152_v60, %v150_v61 }
 0x242   :  { %vm155_vm5 = vcmp.eq.s32.totalorder %v121_v35, %v153_v62 }
 0x243   :  { %274 = vmatmul.msk.f32.gmra.mxu1 %vm155_vm5, %v398_v58 }
 0x245   :  { %v218_v9 = vpop.xlane.xlu2 %217 }
 0x246   :  { %283 = vrsqrt.f32 %v218_v9  ;;  %vm227_vm6 = vweird.f32 %v218_v9 }
 0x24c   :  { %v284_v10 = vpop.eup %283 }
 0x24d   :  { %v222_v12 = vmul.f32 %v284_v10, %v218_v9  ;;  %vm228_vm7 = vweird.f32 %v284_v10 }
 0x24e   :  { %vm229_vm8 = vmor %vm227_vm6, %vm228_vm7 }
 0x24f   :  { %v223_v13 = vmul.f32 %v284_v10, %v222_v12 }
 0x251   :  { %v224_v18 = vmul.f32 0.5, %v223_v13 }
 0x253   :  { %v225_v21 = vsub.f32 1.5, %v224_v18 }
 0x255   :  { %v226_v29 = vmul.f32 %v284_v10, %v225_v21 }
 0x257   :  { %v230_v37 = vsel %vm229_vm8, %v284_v10, %v226_v29 }
 0x2b8   :  { %v177_v1 = vpop.f32.mrf.mxu1 }
 0x2b9   :  { %v183_v2 = vsub.f32 %v443_v24, %v177_v1 }
 0x2bb   :  { %v185_v3 = vmul.f32 %v183_v2, %v183_v2 }
 0x2bd   :  { %187 = vadd.xlane.f32.xlu0 %v185_v3 }
 0x2c0   :  { %v180_v5 = vpop.f32.mrf.mxu1 }
 0x2c1   :  { %v184_v6 = vsub.f32 %v445_v25, %v180_v5 }
 0x2c3   :  { %v186_v8 = vmul.f32 %v184_v6, %v184_v6 }
 0x2c5   :  { %219 = vadd.xlane.f32.xlu0 %v216_v7  ;;  %189 = vadd.xlane.f32.xlu1 %v186_v8 }
 0x330   :  { %v188_v11 = vpop.xlane.xlu0 %187 }
 0x331   :  { %285 = vrsqrt.f32 %v188_v11  ;;  %vm198_vm9 = vcmp.eq.f32.partialorder %v188_v11, inf  ;;  %v201_v33 = vand.u32 2147483648, %v188_v11  ;;  %vm200_vm10 = vcmp.eq.f32.partialorder %v188_v11, 0.0 }
 0x337   :  { %v286_v14 = vpop.eup %285 }
 0x338   :  { %v192_v15 = vmul.f32 %v286_v14, %v188_v11  ;;  %v190_v16 = vpop.xlane.xlu1 %189  ;;  %v220_v17 = vpop.xlane.xlu0 %219 }
 0x339   :  { %287 = vrsqrt.f32 %v190_v16  ;;  %vm210_vm12 = vcmp.eq.f32.partialorder %v190_v16, inf  ;;  %v213_v48 = vand.u32 2147483648, %v190_v16  ;;  %vm237_vm13 = vweird.f32 %v220_v17 }
 0x33a   :  { %v193_v19 = vmul.f32 %v286_v14, %v192_v15  ;;  %289 = vrsqrt.f32 %v220_v17  ;;  %vm212_vm14 = vcmp.eq.f32.partialorder %v190_v16, 0.0 }
 0x33c   :  { %v194_v20 = vmul.f32 0.5, %v193_v19 }
 0x33e   :  { %v195_v22 = vsub.f32 1.5, %v194_v20 }
 0x33f   :  { %v288_v23 = vpop.eup %287 }
 0x340   :  { %v290_v26 = vpop.eup %289  ;;  %v196_v27 = vmul.f32 %v286_v14, %v195_v22  ;;  %v204_v28 = vmul.f32 %v288_v23, %v190_v16 }
 0x341   :  { %v232_v30 = vmul.f32 %v290_v26, %v220_v17  ;;  %vm238_vm11 = vweird.f32 %v290_v26 }
 0x342   :  { %v197_v31 = vmul.f32 %v196_v27, %v188_v11  ;;  %v205_v32 = vmul.f32 %v288_v23, %v204_v28  ;;  %vm239_vm15 = vmor %vm237_vm13, %vm238_vm11 }
 0x343   :  { %v233_v34 = vmul.f32 %v290_v26, %v232_v30 }
 0x344   :  { %v206_v35 = vmul.f32 0.5, %v205_v32  ;;  %v199_v36 = vsel %vm198_vm9, %v188_v11, %v197_v31 }
 0x345   :  { %v234_v38 = vmul.f32 0.5, %v233_v34  ;;  %v202_v39 = vsel %vm200_vm10, %v201_v33, %v199_v36 }
 0x346   :  { %v207_v40 = vsub.f32 1.5, %v206_v35  ;;  %v241_v41 = vmul.f32 %v230_v37, %v202_v39 }
 0x347   :  { %v235_v42 = vsub.f32 1.5, %v234_v38 }
 0x348   :  { %v208_v43 = vmul.f32 %v288_v23, %v207_v40  ;;  %v243_v44 = vadd.f32 1e-12, %v241_v41 }
 0x349   :  { %v236_v45 = vmul.f32 %v290_v26, %v235_v42 }
 0x34a   :  { %v209_v46 = vmul.f32 %v208_v43, %v190_v16  ;;  %v245_v47 = vmul.f32 %v243_v44, %v84_v63 }
 0x34b   :  { %v240_v52 = vsel %vm239_vm15, %v290_v26, %v236_v45 }
 0x34c   :  { %v211_v49 = vsel %vm210_vm12, %v190_v16, %v209_v46  ;;  %v247_v50 = vadd.f32 %v245_v47, %v443_v24 }
 0x34d   :  { %v214_v51 = vsel %vm212_vm14, %v213_v48, %v211_v49 }
 0x34e   :  { %v242_v53 = vmul.f32 %v240_v52, %v214_v51  ;;  %249 = vst [vmem:[#allocation8] sm:$0xff] %v247_v50 }
 0x350   :  { %v244_v54 = vadd.f32 1e-12, %v242_v53 }
 0x352   :  { %v246_v55 = vmul.f32 %v244_v54, %v453_v4 }
 0x354   :  { %v248_v56 = vadd.f32 %v246_v55, %v445_v25 }
 0x356   :  { %250 = vst [vmem:[#allocation8 + $0x8] sm:$0xff] %v248_v56 }
 0x357   :  { %263 = dma.vmem_to_hbm [thread:$0]  %s256_s5, 256, %s258_s8, [#allocation4], %s394_s23, %s394_s23, %s395_s24  }
 0x358   :  { %391 = dma.done.wait [#allocation4], 256  }
 0x359   :  { %392 = vsyncadd [#allocation4], 4294967040 }
 0x35a   :  { %268 = vsyncpa [#allocation3], 1 }
 0x35b   :  { %269 = vsyncpa [#allocation6], 1 }
 0x35c   :  { %270 = vsyncpa [#allocation4], 1 }

</bundles_post_ra>
